<compile_context>
chip_gen: v7x
topology: tpu7x:2x2x1
jax: 0.10.0
libtpu: 0.0.40
codegen_flags: <defaults>
</compile_context>

<pallas_src>
import jax
import jax.numpy as jnp
import numpy as np
from jax.experimental import pallas as pl
from jax.experimental.pallas import tpu as pltpu

NUM_NEURONS = (50, 20)
LANE = 128  # TPU lane width; feature dims are padded to multiples of this.


def _round_up(n, m):
    return ((n + m - 1) // m) * m


def _mlp_kernel(x_ref, w1_ref, b1_ref, w2_ref, b2_ref, w3_ref, b3_ref, o_ref):
    """Fused 3-layer MLP on one (TB, in_feat) batch tile.

    Weights/biases are whole-array VMEM-resident blocks (constant index_map);
    intermediates never leave vregs/VMEM.  The input tile arrives in its
    stored dtype and is cast to the weight dtype right before the first MXU
    dot.  All matmuls accumulate in f32; biases are added in f32.
    """
    x = x_ref[...].astype(w1_ref.dtype)          # in-kernel bf16 cast (no-op for f32 path)
    h = jnp.dot(x, w1_ref[...], preferred_element_type=jnp.float32)
    h = jnp.maximum(h + b1_ref[...], 0.0).astype(w2_ref.dtype)
    h = jnp.dot(h, w2_ref[...], preferred_element_type=jnp.float32)
    h = jnp.maximum(h + b2_ref[...], 0.0).astype(w3_ref.dtype)
    out = jnp.dot(h, w3_ref[...], preferred_element_type=jnp.float32)
    o_ref[...] = (out + b3_ref[...]).astype(o_ref.dtype)


def init_params(key, in_feat, out_feat, num_neurons=NUM_NEURONS):
    """PyTorch-style Linear init: W ~ U(-1/sqrt(fan_in), 1/sqrt(fan_in)), shape (out, in)."""
    dims = [in_feat, *num_neurons, out_feat]
    raw = {}
    for i in range(len(dims) - 1):
        fan_in, fan_out = dims[i], dims[i + 1]
        key, kw, kb = jax.random.split(key, 3)
        bound = 1.0 / np.sqrt(fan_in)
        raw[f"w{i + 1}"] = jax.random.uniform(
            kw, (fan_out, fan_in), jnp.float32, -bound, bound)
        raw[f"b{i + 1}"] = jax.random.uniform(
            kb, (fan_out,), jnp.float32, -bound, bound)
    return raw


def prepare_params(raw, compute_dtype=jnp.bfloat16):
    """Transpose to (in, out), zero-pad output/hidden feature dims to 128 lanes,
    cast weights to the compute dtype.  Biases stay f32 (added post-accumulate).

    Zero padding is exact: padded hidden columns produce ReLU(0)=0 activations,
    padded weight rows/columns contribute nothing, and padded output columns
    are zero and sliced off in the wrapper.
    """
    n_layers = len([k for k in raw if k.startswith("w")])
    prepped = {}
    for i in range(1, n_layers + 1):
        w = raw[f"w{i}"]                      # (out, in), PyTorch layout
        b = raw[f"b{i}"]                      # (out,)
        out_d, in_d = w.shape
        in_pad = in_d if i == 1 else _round_up(in_d, LANE)
        out_pad = _round_up(out_d, LANE)
        wt = jnp.zeros((in_pad, out_pad), jnp.float32).at[:in_d, :out_d].set(w.T)
        bp = jnp.zeros((1, out_pad), jnp.float32).at[0, :out_d].set(b)
        prepped[f"w{i}"] = wt.astype(compute_dtype)
        prepped[f"b{i}"] = bp
    return prepped


def _pick_batch_tile(B, block_b, target_steps):
    """Sublane-aligned batch tile with >= target_steps grid steps (when possible),
    capped at block_b.  If the tile would cover the whole batch, use B exactly
    (block dim equal to the full array dim satisfies the (8,128) rule)."""
    tb = max(8, _round_up(pl.cdiv(B, target_steps), 8))
    tb = min(tb, max(8, (block_b // 8) * 8))
    if tb >= B:
        tb = B
    return tb


def fashion_mnist_classifier_forward(x, prepped, out_feat, *, block_b=1024,
                                     target_steps=8, out_dtype=jnp.bfloat16,
                                     num_neurons=NUM_NEURONS):
    """Run the fused MLP.  x: [B, in_feat] (f32 or bf16, streamed as stored).
    Returns [B, out_feat] in out_dtype (bf16 by default; pass jnp.float32 for
    full-precision logits)."""
    del num_neurons  # layer sizes are baked into the prepared params
    B, in_feat = x.shape
    out_pad = prepped["w3"].shape[1]

    tb = _pick_batch_tile(B, block_b, target_steps)
    grid = (pl.cdiv(B, tb),)          # partial last block handled by Pallas

    flops = 2 * B * sum(
        prepped[f"w{i}"].shape[0] * prepped[f"w{i}"].shape[1] for i in (1, 2, 3))
    bytes_accessed = (
        x.size * x.dtype.itemsize
        + sum(v.size * v.dtype.itemsize for v in prepped.values())
        + B * out_pad * jnp.dtype(out_dtype).itemsize)

    def _call(weight_pipeline_mode):
        const = lambda i: (0, 0)          # weights/biases: one resident block
        batch_map = lambda i: (i, 0)      # x / out: stream batch tiles
        extra = ({} if weight_pipeline_mode is None
                 else {"pipeline_mode": weight_pipeline_mode})
        in_specs = [pl.BlockSpec((tb, in_feat), batch_map)]
        for i in (1, 2, 3):
            in_specs.append(pl.BlockSpec(prepped[f"w{i}"].shape, const, **extra))
            in_specs.append(pl.BlockSpec(prepped[f"b{i}"].shape, const, **extra))
        return pl.pallas_call(
            _mlp_kernel,
            out_shape=jax.ShapeDtypeStruct((B, out_pad), out_dtype),
            grid=grid,
            in_specs=in_specs,
            out_specs=pl.BlockSpec((tb, out_pad), batch_map),
            compiler_params=pltpu.CompilerParams(
                dimension_semantics=("parallel",)),   # shards batch across v7x TCs
            cost_estimate=pl.CostEstimate(
                flops=flops, transcendentals=0, bytes_accessed=bytes_accessed),
        )(x, prepped["w1"], prepped["b1"], prepped["w2"], prepped["b2"],
          prepped["w3"], prepped["b3"])

    try:
        # Block-invariant operands: request a single resident buffer.
        out = _call(pl.Buffered(1))
    except Exception:
        # Fallback for JAX versions that reject buffer_count=1: default buffering.
        out = _call(None)

    return out[:, :out_feat]


def _reference_forward(x, raw):
    h = jnp.maximum(x @ raw["w1"].T + raw["b1"], 0.0)
    h = jnp.maximum(h @ raw["w2"].T + raw["b2"], 0.0)
    return h @ raw["w3"].T + raw["b3"]


if __name__ == "__main__":
    key = jax.random.PRNGKey(0)
    k_x, k_p, k_x2 = jax.random.split(key, 3)

    batch, in_feat, out_feat = 8, 64, 10
    raw = init_params(k_p, in_feat, out_feat, NUM_NEURONS)

    # 1) f32 compute + f32 output, single tile: must match the reference tightly.
    x = jax.random.normal(k_x, (batch, in_feat), dtype=jnp.float32)
    ref = jax.block_until_ready(_reference_forward(x, raw))
    p32 = prepare_params(raw, compute_dtype=jnp.float32)
    out32 = jax.block_until_ready(
        fashion_mnist_classifier_forward(x, p32, out_feat, out_dtype=jnp.float32))
    if not np.allclose(np.asarray(out32), np.asarray(ref), rtol=1e-5, atol=1e-5):
        raise AssertionError("f32 Pallas output does not match reference")

    # 2) bf16 compute + bf16 output, multi-tile grid with a partial last block:
    #    B=100 -> tb=16 -> grid of 7 (last block covers only 4 valid rows).
    batch2 = 100
    x2 = jax.random.normal(k_x2, (batch2, in_feat), dtype=jnp.float32)
    ref2 = jax.block_until_ready(_reference_forward(x2, raw))
    pbf = prepare_params(raw, compute_dtype=jnp.bfloat16)
    outbf = jax.block_until_ready(
        fashion_mnist_classifier_forward(x2, pbf, out_feat, block_b=32))
    if not np.allclose(np.asarray(outbf, dtype=np.float32), np.asarray(ref2),
                       rtol=5e-2, atol=5e-2):
        raise AssertionError("bf16 Pallas output does not match reference")

    print("KERNEL_OK")
</pallas_src>

<mosaic_0001>
module attributes {stable_mosaic.version = 11 : i64} {
  func.func @_mlp_kernel(%arg0: i32, %arg1: memref<8x64xf32, #tpu.memory_space<vmem>>, %arg2: memref<64x128xf32, #tpu.memory_space<vmem>>, %arg3: memref<1x128xf32, #tpu.memory_space<vmem>>, %arg4: memref<128x128xf32, #tpu.memory_space<vmem>>, %arg5: memref<1x128xf32, #tpu.memory_space<vmem>>, %arg6: memref<128x128xf32, #tpu.memory_space<vmem>>, %arg7: memref<1x128xf32, #tpu.memory_space<vmem>>, %arg8: memref<8x128xf32, #tpu.memory_space<vmem>>) attributes {dimension_semantics = [#tpu.dimension_semantics<parallel>], iteration_bounds = array<i64: 1>, scalar_prefetch = 0 : i64, scratch_operands = 0 : i64, tpu.core_type = #tpu.core_type<tc>, window_params = [{transform_indices = @transform_0, window_bounds = array<i64: 8, 64>}, {pipeline_mode = #tpu.pipeline_mode<synchronous>, transform_indices = @transform_1, window_bounds = array<i64: 64, 128>}, {pipeline_mode = #tpu.pipeline_mode<synchronous>, transform_indices = @transform_2, window_bounds = array<i64: 1, 128>}, {pipeline_mode = #tpu.pipeline_mode<synchronous>, transform_indices = @transform_3, window_bounds = array<i64: 128, 128>}, {pipeline_mode = #tpu.pipeline_mode<synchronous>, transform_indices = @transform_4, window_bounds = array<i64: 1, 128>}, {pipeline_mode = #tpu.pipeline_mode<synchronous>, transform_indices = @transform_5, window_bounds = array<i64: 128, 128>}, {pipeline_mode = #tpu.pipeline_mode<synchronous>, transform_indices = @transform_6, window_bounds = array<i64: 1, 128>}, {transform_indices = @transform_7, window_bounds = array<i64: 8, 128>}]} {
    %c0 = arith.constant 0 : index
    %c0_0 = arith.constant 0 : index
    %0 = vector.load %arg1[%c0, %c0_0] : memref<8x64xf32, #tpu.memory_space<vmem>>, vector<8x64xf32>
    %c0_1 = arith.constant 0 : index
    %c0_2 = arith.constant 0 : index
    %1 = vector.load %arg2[%c0_1, %c0_2] : memref<64x128xf32, #tpu.memory_space<vmem>>, vector<64x128xf32>
    %cst = arith.constant dense<0.000000e+00> : vector<8x128xf32>
    %2 = tpu.matmul %0, %1, %cst {dimension_numbers = #tpu.dot_dimension_numbers<[1], [0], [0], [1], [0, 0, 1, 1], [], []>} : vector<8x64xf32>, vector<64x128xf32>, vector<8x128xf32> -> vector<8x128xf32>
    %c0_3 = arith.constant 0 : index
    %c0_4 = arith.constant 0 : index
    %3 = vector.load %arg3[%c0_3, %c0_4] : memref<1x128xf32, #tpu.memory_space<vmem>>, vector<1x128xf32>
    %4 = vector.broadcast %3 : vector<1x128xf32> to vector<8x128xf32>
    %5 = arith.addf %2, %4 : vector<8x128xf32>
    %cst_5 = arith.constant 0.000000e+00 : f32
    %6 = vector.broadcast %cst_5 : f32 to vector<8x128xf32>
    %7 = arith.maximumf %5, %6 : vector<8x128xf32>
    %c0_6 = arith.constant 0 : index
    %c0_7 = arith.constant 0 : index
    %8 = vector.load %arg4[%c0_6, %c0_7] : memref<128x128xf32, #tpu.memory_space<vmem>>, vector<128x128xf32>
    %cst_8 = arith.constant dense<0.000000e+00> : vector<8x128xf32>
    %9 = tpu.matmul %7, %8, %cst_8 {dimension_numbers = #tpu.dot_dimension_numbers<[1], [0], [0], [1], [0, 0, 1, 1], [], []>} : vector<8x128xf32>, vector<128x128xf32>, vector<8x128xf32> -> vector<8x128xf32>
    %c0_9 = arith.constant 0 : index
    %c0_10 = arith.constant 0 : index
    %10 = vector.load %arg5[%c0_9, %c0_10] : memref<1x128xf32, #tpu.memory_space<vmem>>, vector<1x128xf32>
    %11 = vector.broadcast %10 : vector<1x128xf32> to vector<8x128xf32>
    %12 = arith.addf %9, %11 : vector<8x128xf32>
    %cst_11 = arith.constant 0.000000e+00 : f32
    %13 = vector.broadcast %cst_11 : f32 to vector<8x128xf32>
    %14 = arith.maximumf %12, %13 : vector<8x128xf32>
    %c0_12 = arith.constant 0 : index
    %c0_13 = arith.constant 0 : index
    %15 = vector.load %arg6[%c0_12, %c0_13] : memref<128x128xf32, #tpu.memory_space<vmem>>, vector<128x128xf32>
    %cst_14 = arith.constant dense<0.000000e+00> : vector<8x128xf32>
    %16 = tpu.matmul %14, %15, %cst_14 {dimension_numbers = #tpu.dot_dimension_numbers<[1], [0], [0], [1], [0, 0, 1, 1], [], []>} : vector<8x128xf32>, vector<128x128xf32>, vector<8x128xf32> -> vector<8x128xf32>
    %c0_15 = arith.constant 0 : index
    %c0_16 = arith.constant 0 : index
    %17 = vector.load %arg7[%c0_15, %c0_16] : memref<1x128xf32, #tpu.memory_space<vmem>>, vector<1x128xf32>
    %18 = vector.broadcast %17 : vector<1x128xf32> to vector<8x128xf32>
    %19 = arith.addf %16, %18 : vector<8x128xf32>
    %c0_17 = arith.constant 0 : index
    %c0_18 = arith.constant 0 : index
    %20 = vector.load %arg8[%c0_17, %c0_18] : memref<8x128xf32, #tpu.memory_space<vmem>>, vector<8x128xf32>
    tpu.vector_store %arg8[%c0_17, %c0_18], %19 {strides = array<i32>} : memref<8x128xf32, #tpu.memory_space<vmem>>, vector<8x128xf32>,
    return
  }
  func.func @transform_0(%arg0: i32) -> (i32, i32) {
    %c0_i32 = arith.constant 0 : i32
    %c0_i32_0 = arith.constant 0 : i32
    return %arg0, %c0_i32 : i32, i32
  }
  func.func @transform_1(%arg0: i32) -> (i32, i32) {
    %c0_i32 = arith.constant 0 : i32
    %c0_i32_0 = arith.constant 0 : i32
    %c0_i32_1 = arith.constant 0 : i32
    return %c0_i32, %c0_i32_0 : i32, i32
  }
  func.func @transform_2(%arg0: i32) -> (i32, i32) {
    %c0_i32 = arith.constant 0 : i32
    %c0_i32_0 = arith.constant 0 : i32
    %c0_i32_1 = arith.constant 0 : i32
    return %c0_i32, %c0_i32_0 : i32, i32
  }
  func.func @transform_3(%arg0: i32) -> (i32, i32) {
    %c0_i32 = arith.constant 0 : i32
    %c0_i32_0 = arith.constant 0 : i32
    %c0_i32_1 = arith.constant 0 : i32
    return %c0_i32, %c0_i32_0 : i32, i32
  }
  func.func @transform_4(%arg0: i32) -> (i32, i32) {
    %c0_i32 = arith.constant 0 : i32
    %c0_i32_0 = arith.constant 0 : i32
    %c0_i32_1 = arith.constant 0 : i32
    return %c0_i32, %c0_i32_0 : i32, i32
  }
  func.func @transform_5(%arg0: i32) -> (i32, i32) {
    %c0_i32 = arith.constant 0 : i32
    %c0_i32_0 = arith.constant 0 : i32
    %c0_i32_1 = arith.constant 0 : i32
    return %c0_i32, %c0_i32_0 : i32, i32
  }
  func.func @transform_6(%arg0: i32) -> (i32, i32) {
    %c0_i32 = arith.constant 0 : i32
    %c0_i32_0 = arith.constant 0 : i32
    %c0_i32_1 = arith.constant 0 : i32
    return %c0_i32, %c0_i32_0 : i32, i32
  }
  func.func @transform_7(%arg0: i32) -> (i32, i32) {
    %c0_i32 = arith.constant 0 : i32
    %c0_i32_0 = arith.constant 0 : i32
    return %arg0, %c0_i32 : i32, i32
  }
}

module attributes {stable_mosaic.version = 11 : i64} {
  func.func @_mlp_kernel(%arg0: i32, %arg1: memref<8x64xf32, #tpu.memory_space<vmem>>, %arg2: memref<64x128xf32, #tpu.memory_space<vmem>>, %arg3: memref<1x128xf32, #tpu.memory_space<vmem>>, %arg4: memref<128x128xf32, #tpu.memory_space<vmem>>, %arg5: memref<1x128xf32, #tpu.memory_space<vmem>>, %arg6: memref<128x128xf32, #tpu.memory_space<vmem>>, %arg7: memref<1x128xf32, #tpu.memory_space<vmem>>, %arg8: memref<8x128xf32, #tpu.memory_space<vmem>>) attributes {dimension_semantics = [#tpu.dimension_semantics<parallel>], iteration_bounds = array<i64: 1>, scalar_prefetch = 0 : i64, scratch_operands = 0 : i64, tpu.core_type = #tpu.core_type<tc>, window_params = [{transform_indices = @transform_0, window_bounds = array<i64: 8, 64>}, {pipeline_mode = #tpu.pipeline_mode<synchronous>, transform_indices = @transform_1, window_bounds = array<i64: 64, 128>}, {pipeline_mode = #tpu.pipeline_mode<synchronous>, transform_indices = @transform_2, window_bounds = array<i64: 1, 128>}, {pipeline_mode = #tpu.pipeline_mode<synchronous>, transform_indices = @transform_3, window_bounds = array<i64: 128, 128>}, {pipeline_mode = #tpu.pipeline_mode<synchronous>, transform_indices = @transform_4, window_bounds = array<i64: 1, 128>}, {pipeline_mode = #tpu.pipeline_mode<synchronous>, transform_indices = @transform_5, window_bounds = array<i64: 128, 128>}, {pipeline_mode = #tpu.pipeline_mode<synchronous>, transform_indices = @transform_6, window_bounds = array<i64: 1, 128>}, {transform_indices = @transform_7, window_bounds = array<i64: 8, 128>}]} {
    %c0 = arith.constant 0 : index
    %c0_0 = arith.constant 0 : index
    %0 = vector.load %arg1[%c0, %c0_0] : memref<8x64xf32, #tpu.memory_space<vmem>>, vector<8x64xf32>
    %c0_1 = arith.constant 0 : index
    %c0_2 = arith.constant 0 : index
    %1 = vector.load %arg2[%c0_1, %c0_2] : memref<64x128xf32, #tpu.memory_space<vmem>>, vector<64x128xf32>
    %cst = arith.constant dense<0.000000e+00> : vector<8x128xf32>
    %2 = tpu.matmul %0, %1, %cst {dimension_numbers = #tpu.dot_dimension_numbers<[1], [0], [0], [1], [0, 0, 1, 1], [], []>} : vector<8x64xf32>, vector<64x128xf32>, vector<8x128xf32> -> vector<8x128xf32>
    %c0_3 = arith.constant 0 : index
    %c0_4 = arith.constant 0 : index
    %3 = vector.load %arg3[%c0_3, %c0_4] : memref<1x128xf32, #tpu.memory_space<vmem>>, vector<1x128xf32>
    %4 = vector.broadcast %3 : vector<1x128xf32> to vector<8x128xf32>
    %5 = arith.addf %2, %4 : vector<8x128xf32>
    %cst_5 = arith.constant 0.000000e+00 : f32
    %6 = vector.broadcast %cst_5 : f32 to vector<8x128xf32>
    %7 = arith.maximumf %5, %6 : vector<8x128xf32>
    %c0_6 = arith.constant 0 : index
    %c0_7 = arith.constant 0 : index
    %8 = vector.load %arg4[%c0_6, %c0_7] : memref<128x128xf32, #tpu.memory_space<vmem>>, vector<128x128xf32>
    %cst_8 = arith.constant dense<0.000000e+00> : vector<8x128xf32>
    %9 = tpu.matmul %7, %8, %cst_8 {dimension_numbers = #tpu.dot_dimension_numbers<[1], [0], [0], [1], [0, 0, 1, 1], [], []>} : vector<8x128xf32>, vector<128x128xf32>, vector<8x128xf32> -> vector<8x128xf32>
    %c0_9 = arith.constant 0 : index
    %c0_10 = arith.constant 0 : index
    %10 = vector.load %arg5[%c0_9, %c0_10] : memref<1x128xf32, #tpu.memory_space<vmem>>, vector<1x128xf32>
    %11 = vector.broadcast %10 : vector<1x128xf32> to vector<8x128xf32>
    %12 = arith.addf %9, %11 : vector<8x128xf32>
    %cst_11 = arith.constant 0.000000e+00 : f32
    %13 = vector.broadcast %cst_11 : f32 to vector<8x128xf32>
    %14 = arith.maximumf %12, %13 : vector<8x128xf32>
    %c0_12 = arith.constant 0 : index
    %c0_13 = arith.constant 0 : index
    %15 = vector.load %arg6[%c0_12, %c0_13] : memref<128x128xf32, #tpu.memory_space<vmem>>, vector<128x128xf32>
    %cst_14 = arith.constant dense<0.000000e+00> : vector<8x128xf32>
    %16 = tpu.matmul %14, %15, %cst_14 {dimension_numbers = #tpu.dot_dimension_numbers<[1], [0], [0], [1], [0, 0, 1, 1], [], []>} : vector<8x128xf32>, vector<128x128xf32>, vector<8x128xf32> -> vector<8x128xf32>
    %c0_15 = arith.constant 0 : index
    %c0_16 = arith.constant 0 : index
    %17 = vector.load %arg7[%c0_15, %c0_16] : memref<1x128xf32, #tpu.memory_space<vmem>>, vector<1x128xf32>
    %18 = vector.broadcast %17 : vector<1x128xf32> to vector<8x128xf32>
    %19 = arith.addf %16, %18 : vector<8x128xf32>
    %c0_17 = arith.constant 0 : index
    %c0_18 = arith.constant 0 : index
    %20 = vector.load %arg8[%c0_17, %c0_18] : memref<8x128xf32, #tpu.memory_space<vmem>>, vector<8x128xf32>
    tpu.vector_store %arg8[%c0_17, %c0_18], %19 {strides = array<i32>} : memref<8x128xf32, #tpu.memory_space<vmem>>, vector<8x128xf32>,
    return
  }
  func.func @transform_0(%arg0: i32) -> (i32, i32) {
    %c0_i32 = arith.constant 0 : i32
    %c0_i32_0 = arith.constant 0 : i32
    return %arg0, %c0_i32 : i32, i32
  }
  func.func @transform_1(%arg0: i32) -> (i32, i32) {
    %c0_i32 = arith.constant 0 : i32
    %c0_i32_0 = arith.constant 0 : i32
    %c0_i32_1 = arith.constant 0 : i32
    return %c0_i32, %c0_i32_0 : i32, i32
  }
  func.func @transform_2(%arg0: i32) -> (i32, i32) {
    %c0_i32 = arith.constant 0 : i32
    %c0_i32_0 = arith.constant 0 : i32
    %c0_i32_1 = arith.constant 0 : i32
    return %c0_i32, %c0_i32_0 : i32, i32
  }
  func.func @transform_3(%arg0: i32) -> (i32, i32) {
    %c0_i32 = arith.constant 0 : i32
    %c0_i32_0 = arith.constant 0 : i32
    %c0_i32_1 = arith.constant 0 : i32
    return %c0_i32, %c0_i32_0 : i32, i32
  }
  func.func @transform_4(%arg0: i32) -> (i32, i32) {
    %c0_i32 = arith.constant 0 : i32
    %c0_i32_0 = arith.constant 0 : i32
    %c0_i32_1 = arith.constant 0 : i32
    return %c0_i32, %c0_i32_0 : i32, i32
  }
  func.func @transform_5(%arg0: i32) -> (i32, i32) {
    %c0_i32 = arith.constant 0 : i32
    %c0_i32_0 = arith.constant 0 : i32
    %c0_i32_1 = arith.constant 0 : i32
    return %c0_i32, %c0_i32_0 : i32, i32
  }
  func.func @transform_6(%arg0: i32) -> (i32, i32) {
    %c0_i32 = arith.constant 0 : i32
    %c0_i32_0 = arith.constant 0 : i32
    %c0_i32_1 = arith.constant 0 : i32
    return %c0_i32, %c0_i32_0 : i32, i32
  }
  func.func @transform_7(%arg0: i32) -> (i32, i32) {
    %c0_i32 = arith.constant 0 : i32
    %c0_i32_0 = arith.constant 0 : i32
    return %arg0, %c0_i32 : i32, i32
  }
}

</mosaic_0001>

<bundles_post_ra>
// kernel: tpu_custom_call.1
= control target key start
LH: loop header
LB: loop body
LE: loop exit
PB: predicated region body
PF: predicated region fallthrough
CT: control target
= control target key end

     0   :  { %12 = vsyncpa [#allocation3], 0  ;;  %s851_s0 = inlined_call_operand.hbm [shape: f32[8,64], index: 0, kind: input, shape index: {}]   ;;  %s852_s1 = inlined_call_operand.hbm [shape: f32[64,128], index: 1, kind: input, shape index: {}]   ;;  %s853_s2 = inlined_call_operand.vmem [shape: f32[1,128], index: 2, kind: input, shape index: {}]   ;;  %s854_s3 = inlined_call_operand.hbm [shape: f32[128,128], index: 3, kind: input, shape index: {}]   ;;  %s855_s4 = inlined_call_operand.vmem [shape: f32[1,128], index: 4, kind: input, shape index: {}]   ;;  %s856_s5 = inlined_call_operand.hbm [shape: f32[128,128], index: 5, kind: input, shape index: {}]   ;;  %s857_s6 = inlined_call_operand.vmem [shape: f32[1,128], index: 6, kind: input, shape index: {}]   ;;  %s858_s7 = inlined_call_operand.hbm [shape: f32[8,128], index: 7, kind: output, shape index: {}]  }
   0x1   :  { %13 = vsyncpa [#allocation6], 0 }
   0x2   :  { %14 = vsyncpa [#allocation9], 0 }
   0x3   :  { %15 = vsyncpa [#allocation4], 0  ;;  %s700_s24 = smov [#allocation5]   ;;  %s582_s28 = scalar_lea.hbm %s852_s1, 1024 }
   0x4   :  { %s31_s25 = sshll.u32 %s700_s24, 4  ;;  %p583_p0 = scmp.ne.s32.totalorder %s852_s1, %s582_s28  ;;  %s32_s25 = int_to_ptr.vmem [resolvable:$true] %s31_s25 }
   0x5   :  { %p586_p1 = scmp.lt.u32.totalorder %s582_s28, %s852_s1 }
   0x7   :  { %p588_p2 = pnand %p586_p1, %p583_p0 }
   0x9   :  { %591 = shalt.err (!%p588_p2)
}
   0xa   :  { %s592_s10 = scalar_lea.vmem %s32_s25, 1024  ;;  %p597_p4 = scmp.lt.s32.totalorder %s32_s25, %s32_s25 }
   0xb   :  { %p593_p3 = scmp.ne.s32.totalorder %s32_s25, %s592_s10  ;;  %p598_p5 = scmp.lt.s32.totalorder %s592_s10, %s592_s10 }
   0xd   :  { %p599_p6 = por %p598_p5, %p597_p4 }
   0xf   :  { %p600_p7 = pnand %p599_p6, %p593_p3 }
  0x11   :  { %603 = shalt.err (!%p600_p7)
}
  0x12   :  { %s701_s11 = smov 128   ;;  %s702_s12 = smov 8  }
  0x13   :  { %37 = dma.hbm_to_vmem [thread:$0]  %s852_s1, 1024, %s32_s25, [#allocation6], %s701_s11, %s701_s11, %s702_s12  }
  0x14   :  { %s703_s15 = smov [#allocation2]   ;;  %s704_s17 = smov [#allocation7]  }
  0x15   :  { %s22_s16 = sshll.u32 %s703_s15, 4  ;;  %s45_s18 = sshll.u32 %s704_s17, 4  ;;  %s23_s16 = int_to_ptr.vmem [resolvable:$true] %s22_s16  ;;  %s46_s18 = int_to_ptr.vmem [resolvable:$true] %s45_s18 }
  0x16   :  { %s604_s21 = scalar_lea.hbm %s851_s0, 128 }
  0x17   :  { %p605_p8 = scmp.ne.s32.totalorder %s851_s0, %s604_s21  ;;  %p608_p9 = scmp.lt.u32.totalorder %s604_s21, %s851_s0 }
  0x19   :  { %p610_p10 = pnand %p608_p9, %p605_p8 }
  0x1b   :  { %613 = shalt.err (!%p610_p10)
}
  0x1c   :  { %s614_s1 = scalar_lea.vmem %s23_s16, 128  ;;  %p619_p12 = scmp.lt.s32.totalorder %s23_s16, %s23_s16 }
  0x1d   :  { %p615_p11 = scmp.ne.s32.totalorder %s23_s16, %s614_s1  ;;  %p620_p13 = scmp.lt.s32.totalorder %s614_s1, %s614_s1 }
  0x1f   :  { %p621_p0 = por %p620_p13, %p619_p12 }
  0x21   :  { %p622_p1 = pnand %p621_p0, %p615_p11 }
  0x23   :  { %625 = shalt.err (!%p622_p1)
}
  0x24   :  { %25 = dma.hbm_to_vmem [thread:$0]  %s851_s0, 128, %s23_s16, [#allocation3]  }
  0x25   :  { %s626_s30 = scalar_lea.hbm %s854_s3, 2048 }
  0x26   :  { %p627_p2 = scmp.ne.s32.totalorder %s854_s3, %s626_s30  ;;  %p630_p3 = scmp.lt.u32.totalorder %s626_s30, %s854_s3 }
  0x28   :  { %p632_p4 = pnand %p630_p3, %p627_p2 }
  0x2a   :  { %635 = shalt.err (!%p632_p4)
}
  0x2b   :  { %s636_s14 = scalar_lea.vmem %s46_s18, 2048  ;;  %p641_p6 = scmp.lt.s32.totalorder %s46_s18, %s46_s18 }
  0x2c   :  { %p637_p5 = scmp.ne.s32.totalorder %s46_s18, %s636_s14  ;;  %p642_p7 = scmp.lt.s32.totalorder %s636_s14, %s636_s14 }
  0x2e   :  { %p643_p8 = por %p642_p7, %p641_p6 }
  0x30   :  { %p644_p9 = pnand %p643_p8, %p637_p5 }
  0x32   :  { %647 = shalt.err (!%p644_p9)
}
  0x33   :  { %51 = dma.hbm_to_vmem [thread:$0]  %s854_s3, 2048, %s46_s18, [#allocation6], %s701_s11, %s701_s11, %s702_s12  }
  0x34   :  { %s705_s16 = smov [#allocation8]   ;;  %s648_s21 = scalar_lea.hbm %s856_s5, 2048 }
  0x35   :  { %s59_s17 = sshll.u32 %s705_s16, 4  ;;  %p649_p10 = scmp.ne.s32.totalorder %s856_s5, %s648_s21  ;;  %s60_s17 = int_to_ptr.vmem [resolvable:$true] %s59_s17 }
  0x36   :  { %p652_p11 = scmp.lt.u32.totalorder %s648_s21, %s856_s5 }
  0x38   :  { %p654_p12 = pnand %p652_p11, %p649_p10 }
  0x3a   :  { %657 = shalt.err (!%p654_p12)
}
  0x3b   :  { %s658_s1 = scalar_lea.vmem %s60_s17, 2048  ;;  %p663_p0 = scmp.lt.s32.totalorder %s60_s17, %s60_s17 }
  0x3c   :  { %p659_p13 = scmp.ne.s32.totalorder %s60_s17, %s658_s1  ;;  %p664_p1 = scmp.lt.s32.totalorder %s658_s1, %s658_s1 }
  0x3e   :  { %p665_p2 = por %p664_p1, %p663_p0 }
  0x40   :  { %p666_p3 = pnand %p665_p2, %p659_p13 }
  0x42   :  { %669 = shalt.err (!%p666_p3)
}
  0x43   :  { %65 = dma.hbm_to_vmem [thread:$0]  %s856_s5, 2048, %s60_s17, [#allocation9], %s701_s11, %s701_s11, %s702_s12  }
  0x44   :  { %692 = dma.done.wait [#allocation3], 128  }
  0x45   :  { %693 = vsyncadd [#allocation3], 4294967168 }
  0x46   :  { %694 = dma.done.wait [#allocation6], 3072  }
  0x47   :  { %695 = vsyncadd [#allocation6], 4294964224 }
  0x48   :  { %696 = dma.done.wait [#allocation9], 2048  }
  0x49   :  { %697 = vsyncadd [#allocation9], 4294965248  ;;  %v706_v0 = vmov 0.0|0.0   ;;  %vm707_vm0 = vmmov 0   ;;  %v708_v1 = vmov 0.0   ;;  %v81_v2 = vld [vmem:[#allocation5] sm:$0xff] }
  0x4a   :  { %512 = vmatprep.subr.bf16.mxu0 %v706_v0  ;;  %439 = vmatprep.mubr.msk.f32.mxu0 %vm707_vm0, %v708_v1  ;;  %v82_v3 = vld [vmem:[#allocation5 + $0x8] sm:$0xff]  ;;  %v83_v4 = vld [vmem:[#allocation5 + $0x10] sm:$0xff]  ;;  %v84_v6 = vld [vmem:[#allocation5 + $0x18] sm:$0xff]  ;;  %vm96_vm1 = vcmask 523264   ;;  %s709_s28 = smov [#allocation10]  }
  0x4b   :  { %524 = vmatprep.subr.bf16.mxu1 %v706_v0  ;;  %474 = vmatprep.mubr.msk.f32.mxu1 %vm707_vm0, %v708_v1  ;;  %v513_v5 = vpack.c.bf16 %v82_v3, %v81_v2  ;;  %v516_v7 = vpack.c.bf16 %v84_v6, %v83_v4  ;;  %v171_v8 = vld [vmem:[#allocation7] sm:$0xff]  ;;  %v172_v9 = vld [vmem:[#allocation7 + $0x8] sm:$0xff]  ;;  %v173_v10 = vld [vmem:[#allocation7 + $0x10] sm:$0xff]  ;;  %s365_s29 = sshll.u32 %s709_s28, 4  ;;  %s366_s29 = int_to_ptr.vmem [resolvable:$true] %s365_s29 }
  0x4c   :  { %v85_v11 = vld [vmem:[#allocation5 + $0x20] sm:$0xff]  ;;  %v86_v12 = vld [vmem:[#allocation5 + $0x28] sm:$0xff]  ;;  %v525_v13 = vpack.c.bf16 %v172_v9, %v171_v8  ;;  %v174_v14 = vld [vmem:[#allocation7 + $0x18] sm:$0xff]  ;;  %s670_s30 = scalar_lea.vmem %s366_s29, 128  ;;  %p675_p5 = scmp.lt.s32.totalorder %s366_s29, %s366_s29 }
  0x4d   :  { %514 = vmatpush3.bf16.msra.mxu0 %v513_v5  ;;  %v528_v15 = vpack.c.bf16 %v174_v14, %v173_v10  ;;  %v519_v16 = vpack.c.bf16 %v86_v12, %v85_v11  ;;  %v175_v17 = vld [vmem:[#allocation7 + $0x20] sm:$0xff]  ;;  %v176_v18 = vld [vmem:[#allocation7 + $0x28] sm:$0xff]  ;;  %v87_v19 = vld [vmem:[#allocation5 + $0x30] sm:$0xff]  ;;  %p671_p4 = scmp.ne.s32.totalorder %s366_s29, %s670_s30  ;;  %p676_p6 = scmp.lt.s32.totalorder %s670_s30, %s670_s30 }
  0x4e   :  { %515 = vmatprep.subr.bf16.mxu0 %v706_v0  ;;  %526 = vmatpush3.bf16.msra.mxu1 %v525_v13  ;;  %v88_v20 = vld [vmem:[#allocation5 + $0x38] sm:$0xff]  ;;  %v531_v21 = vpack.c.bf16 %v176_v18, %v175_v17  ;;  %v177_v23 = vld [vmem:[#allocation7 + $0x30] sm:$0xff]  ;;  %v179_v27 = vld [vmem:[#allocation7 + $0x40] sm:$0xff] }
  0x4f   :  { %527 = vmatprep.subr.bf16.mxu1 %v706_v0  ;;  %v522_v22 = vpack.c.bf16 %v88_v20, %v87_v19  ;;  %v178_v24 = vld [vmem:[#allocation7 + $0x38] sm:$0xff]  ;;  %v180_v28 = vld [vmem:[#allocation7 + $0x48] sm:$0xff]  ;;  %v181_v30 = vld [vmem:[#allocation7 + $0x50] sm:$0xff]  ;;  %p677_p7 = por %p676_p6, %p675_p5 }
  0x50   :  { %v534_v25 = vpack.c.bf16 %v178_v24, %v177_v23  ;;  %v80_v26 = vld [vmem:[#allocation2] sm:$0xff]  ;;  %v537_v29 = vpack.c.bf16 %v180_v28, %v179_v27  ;;  %v183_v33 = vld [vmem:[#allocation7 + $0x60] sm:$0xff]  ;;  %v184_v34 = vld [vmem:[#allocation7 + $0x68] sm:$0xff] }
  0x51   :  { %517 = vmatpush3.bf16.msra.mxu0 %v516_v7  ;;  %v182_v31 = vld [vmem:[#allocation7 + $0x58] sm:$0xff]  ;;  %v543_v35 = vpack.c.bf16 %v184_v34, %v183_v33  ;;  %v185_v36 = vld [vmem:[#allocation7 + $0x70] sm:$0xff]  ;;  %v265_v39 = vld [vmem:[#allocation8] sm:$0xff]  ;;  %p678_p8 = pnand %p677_p7, %p671_p4 }
  0x52   :  { %518 = vmatprep.subr.bf16.mxu0 %v706_v0  ;;  %529 = vmatpush3.bf16.msra.mxu1 %v528_v15  ;;  %v540_v32 = vpack.c.bf16 %v182_v31, %v181_v30  ;;  %v186_v37 = vld [vmem:[#allocation7 + $0x78] sm:$0xff]  ;;  %v266_v40 = vld [vmem:[#allocation8 + $0x8] sm:$0xff]  ;;  %v267_v41 = vld [vmem:[#allocation8 + $0x10] sm:$0xff] }
  0x53   :  { %530 = vmatprep.subr.bf16.mxu1 %v706_v0  ;;  %v546_v38 = vpack.c.bf16 %v186_v37, %v185_v36  ;;  %v549_v42 = vpack.c.bf16 %v266_v40, %v265_v39  ;;  %v268_v43 = vld [vmem:[#allocation8 + $0x18] sm:$0xff]  ;;  %v269_v45 = vld [vmem:[#allocation8 + $0x20] sm:$0xff]  ;;  %v270_v46 = vld [vmem:[#allocation8 + $0x28] sm:$0xff] }
  0x54   :  { %v552_v44 = vpack.c.bf16 %v268_v43, %v267_v41  ;;  %v555_v47 = vpack.c.bf16 %v270_v46, %v269_v45  ;;  %v271_v48 = vld [vmem:[#allocation8 + $0x30] sm:$0xff]  ;;  %v272_v49 = vld [vmem:[#allocation8 + $0x38] sm:$0xff]  ;;  %v273_v51 = vld [vmem:[#allocation8 + $0x40] sm:$0xff] }
  0x55   :  { %520 = vmatpush3.bf16.msra.mxu0 %v519_v16  ;;  %v558_v50 = vpack.c.bf16 %v272_v49, %v271_v48  ;;  %v274_v52 = vld [vmem:[#allocation8 + $0x48] sm:$0xff]  ;;  %v275_v54 = vld [vmem:[#allocation8 + $0x50] sm:$0xff]  ;;  %v276_v55 = vld [vmem:[#allocation8 + $0x58] sm:$0xff] }
  0x56   :  { %521 = vmatprep.subr.bf16.mxu0 %v706_v0  ;;  %532 = vmatpush3.bf16.msra.mxu1 %v531_v21  ;;  %v561_v53 = vpack.c.bf16 %v274_v52, %v273_v51  ;;  %v564_v56 = vpack.c.bf16 %v276_v55, %v275_v54  ;;  %v277_v57 = vld [vmem:[#allocation8 + $0x60] sm:$0xff]  ;;  %v278_v58 = vld [vmem:[#allocation8 + $0x68] sm:$0xff]  ;;  %v376_v60 = vld [vmem:[%s853_s2] ss:$0 sm:$0xff] }
  0x57   :  { %533 = vmatprep.subr.bf16.mxu1 %v706_v0  ;;  %v567_v59 = vpack.c.bf16 %v278_v58, %v277_v57  ;;  %v279_v2 = vld [vmem:[#allocation8 + $0x70] sm:$0xff]  ;;  %v280_v3 = vld [vmem:[#allocation8 + $0x78] sm:$0xff] }
  0x58   :  { %v570_v4 = vpack.c.bf16 %v280_v3, %v279_v2  ;;  %v378_v5 = vld [vmem:[%s855_s4] ss:$0 sm:$0xff] }
  0x59   :  { %523 = vmatpush3.bf16.msra.mxu0 %v522_v22  ;;  %v379_v9 = vld [vmem:[%s857_s6] ss:$0 sm:$0xff] }
  0x5a   :  { %548 = vmatprep.subr.bf16.mxu0 %v706_v0  ;;  %535 = vmatpush3.bf16.msra.mxu1 %v534_v25 }
  0x5b   :  { %536 = vmatprep.subr.bf16.mxu1 %v706_v0 }
  0x5c   :  { %440 = vmatmul.mubr.msk.f32.vlgmr.msra.gmra.mrb[0].mxu0 %vm96_vm1, %v80_v26 }
  0x5d   :  { %509 = vmatprep.mubr.msk.f32.mxu0 %vm707_vm0, %v708_v1  ;;  %550 = vmatpush3.bf16.msra.mxu0 %v549_v42 }
  0x5e   :  { %538 = vmatpush3.bf16.msra.mxu1 %v537_v29  ;;  %551 = vmatprep.subr.bf16.mxu0 %v706_v0 }
  0x5f   :  { %539 = vmatprep.subr.bf16.mxu1 %v706_v0 }
  0x61   :  { %553 = vmatpush3.bf16.msra.mxu0 %v552_v44 }
  0x62   :  { %541 = vmatpush3.bf16.msra.mxu1 %v540_v32  ;;  %554 = vmatprep.subr.bf16.mxu0 %v706_v0 }
  0x63   :  { %542 = vmatprep.subr.bf16.mxu1 %v706_v0 }
  0x65   :  { %556 = vmatpush3.bf16.msra.mxu0 %v555_v47 }
  0x66   :  { %544 = vmatpush3.bf16.msra.mxu1 %v543_v35  ;;  %557 = vmatprep.subr.bf16.mxu0 %v706_v0 }
  0x67   :  { %545 = vmatprep.subr.bf16.mxu1 %v706_v0 }
  0x69   :  { %559 = vmatpush3.bf16.msra.mxu0 %v558_v50 }
  0x6a   :  { %547 = vmatpush3.bf16.msra.mxu1 %v546_v38  ;;  %560 = vmatprep.subr.bf16.mxu0 %v706_v0 }
  0x6d   :  { %562 = vmatpush3.bf16.msra.mxu0 %v561_v53 }
  0x6e   :  { %563 = vmatprep.subr.bf16.mxu0 %v706_v0 }
  0x71   :  { %565 = vmatpush3.bf16.msra.mxu0 %v564_v56 }
  0x72   :  { %566 = vmatprep.subr.bf16.mxu0 %v706_v0 }
  0x75   :  { %568 = vmatpush3.bf16.msra.mxu0 %v567_v59 }
  0x76   :  { %569 = vmatprep.subr.bf16.mxu0 %v706_v0 }
  0x79   :  { %571 = vmatpush3.bf16.msra.mxu0 %v570_v4 }
 0x12f   :  { %v166_v61 = vpop.f32.mrb[0].mxu0 }
 0x130   :  { %v167_v62 = vadd.f32 %v376_v60, %v166_v61  ;;  %v441_v63 = vpop.f32.mrb[1].mxu0 }
 0x132   :  { %v170_v1 = vmax.f32 %v167_v62, 0.0 }
 0x134   :  { %475 = vmatmul.mubr.f32.vlgmr.msra.gmra.mrb[0].mxu1 %v170_v1 }
 0x207   :  { %v260_v6 = vpop.f32.mrb[0].mxu1 }
 0x208   :  { %v261_v7 = vadd.f32 %v378_v5, %v260_v6  ;;  %v476_v0 = vpop.f32.mrb[1].mxu1 }
 0x20a   :  { %v264_v8 = vmax.f32 %v261_v7, 0.0 }
 0x20c   :  { %510 = vmatmul.mubr.f32.vlgmr.msra.gmra.mrb[2].mxu0 %v264_v8 }
 0x2df   :  { %v354_v10 = vpop.f32.mrb[2].mxu0 }
 0x2e0   :  { %v355_v11 = vadd.f32 %v379_v9, %v354_v10  ;;  %v511_v12 = vpop.f32.mrb[3].mxu0 }
 0x2e2   :  { %358 = vst [vmem:[#allocation10] sm:$0xff] %v355_v11 }
 0x2e3   :  { %681 = shalt.err (!%p678_p8)
}
 0x2e4   :  { %s682_s9 = scalar_lea.hbm %s858_s7, 128 }
 0x2e5   :  { %p683_p9 = scmp.ne.s32.totalorder %s858_s7, %s682_s9  ;;  %p686_p10 = scmp.lt.u32.totalorder %s682_s9, %s858_s7 }
 0x2e7   :  { %p688_p11 = pnand %p686_p10, %p683_p9 }
 0x2e9   :  { %691 = shalt.err (!%p688_p11)
}
 0x2ea   :  { %368 = dma.vmem_to_hbm [thread:$0]  %s366_s29, 128, %s858_s7, [#allocation4]  }
 0x2eb   :  { %698 = dma.done.wait [#allocation4], 128  }
 0x2ec   :  { %699 = vsyncadd [#allocation4], 4294967168 }
 0x2ed   :  { %372 = vsyncpa [#allocation3], 1 }
 0x2ee   :  { %373 = vsyncpa [#allocation6], 1 }
 0x2ef   :  { %374 = vsyncpa [#allocation9], 1 }
 0x2f0   :  { %375 = vsyncpa [#allocation4], 1 }

// kernel: tpu_custom_call.1
= control target key start
LH: loop header
LB: loop body
LE: loop exit
PB: predicated region body
PF: predicated region fallthrough
CT: control target
= control target key end

     0   :  { %12 = vsyncpa [#allocation3], 0  ;;  %s851_s0 = inlined_call_operand.hbm [shape: f32[8,64], index: 0, kind: input, shape index: {}]   ;;  %s852_s1 = inlined_call_operand.hbm [shape: f32[64,128], index: 1, kind: input, shape index: {}]   ;;  %s853_s2 = inlined_call_operand.vmem [shape: f32[1,128], index: 2, kind: input, shape index: {}]   ;;  %s854_s3 = inlined_call_operand.hbm [shape: f32[128,128], index: 3, kind: input, shape index: {}]   ;;  %s855_s4 = inlined_call_operand.vmem [shape: f32[1,128], index: 4, kind: input, shape index: {}]   ;;  %s856_s5 = inlined_call_operand.hbm [shape: f32[128,128], index: 5, kind: input, shape index: {}]   ;;  %s857_s6 = inlined_call_operand.vmem [shape: f32[1,128], index: 6, kind: input, shape index: {}]   ;;  %s858_s7 = inlined_call_operand.hbm [shape: f32[8,128], index: 7, kind: output, shape index: {}]  }
   0x1   :  { %13 = vsyncpa [#allocation6], 0 }
   0x2   :  { %14 = vsyncpa [#allocation9], 0 }
   0x3   :  { %15 = vsyncpa [#allocation4], 0  ;;  %s700_s24 = smov [#allocation5]   ;;  %s582_s28 = scalar_lea.hbm %s852_s1, 1024 }
   0x4   :  { %s31_s25 = sshll.u32 %s700_s24, 4  ;;  %p583_p0 = scmp.ne.s32.totalorder %s852_s1, %s582_s28  ;;  %s32_s25 = int_to_ptr.vmem [resolvable:$true] %s31_s25 }
   0x5   :  { %p586_p1 = scmp.lt.u32.totalorder %s582_s28, %s852_s1 }
   0x7   :  { %p588_p2 = pnand %p586_p1, %p583_p0 }
   0x9   :  { %591 = shalt.err (!%p588_p2)
}
   0xa   :  { %s592_s10 = scalar_lea.vmem %s32_s25, 1024  ;;  %p597_p4 = scmp.lt.s32.totalorder %s32_s25, %s32_s25 }
   0xb   :  { %p593_p3 = scmp.ne.s32.totalorder %s32_s25, %s592_s10  ;;  %p598_p5 = scmp.lt.s32.totalorder %s592_s10, %s592_s10 }
   0xd   :  { %p599_p6 = por %p598_p5, %p597_p4 }
   0xf   :  { %p600_p7 = pnand %p599_p6, %p593_p3 }
  0x11   :  { %603 = shalt.err (!%p600_p7)
}
  0x12   :  { %s701_s11 = smov 128   ;;  %s702_s12 = smov 8  }
  0x13   :  { %37 = dma.hbm_to_vmem [thread:$0]  %s852_s1, 1024, %s32_s25, [#allocation6], %s701_s11, %s701_s11, %s702_s12  }
  0x14   :  { %s703_s15 = smov [#allocation2]   ;;  %s704_s17 = smov [#allocation7]  }
  0x15   :  { %s22_s16 = sshll.u32 %s703_s15, 4  ;;  %s45_s18 = sshll.u32 %s704_s17, 4  ;;  %s23_s16 = int_to_ptr.vmem [resolvable:$true] %s22_s16  ;;  %s46_s18 = int_to_ptr.vmem [resolvable:$true] %s45_s18 }
  0x16   :  { %s604_s21 = scalar_lea.hbm %s851_s0, 128 }
  0x17   :  { %p605_p8 = scmp.ne.s32.totalorder %s851_s0, %s604_s21  ;;  %p608_p9 = scmp.lt.u32.totalorder %s604_s21, %s851_s0 }
  0x19   :  { %p610_p10 = pnand %p608_p9, %p605_p8 }
  0x1b   :  { %613 = shalt.err (!%p610_p10)
}
  0x1c   :  { %s614_s1 = scalar_lea.vmem %s23_s16, 128  ;;  %p619_p12 = scmp.lt.s32.totalorder %s23_s16, %s23_s16 }
  0x1d   :  { %p615_p11 = scmp.ne.s32.totalorder %s23_s16, %s614_s1  ;;  %p620_p13 = scmp.lt.s32.totalorder %s614_s1, %s614_s1 }
  0x1f   :  { %p621_p0 = por %p620_p13, %p619_p12 }
  0x21   :  { %p622_p1 = pnand %p621_p0, %p615_p11 }
  0x23   :  { %625 = shalt.err (!%p622_p1)
}
  0x24   :  { %25 = dma.hbm_to_vmem [thread:$0]  %s851_s0, 128, %s23_s16, [#allocation3]  }
  0x25   :  { %s626_s30 = scalar_lea.hbm %s854_s3, 2048 }
  0x26   :  { %p627_p2 = scmp.ne.s32.totalorder %s854_s3, %s626_s30  ;;  %p630_p3 = scmp.lt.u32.totalorder %s626_s30, %s854_s3 }
  0x28   :  { %p632_p4 = pnand %p630_p3, %p627_p2 }
  0x2a   :  { %635 = shalt.err (!%p632_p4)
}
  0x2b   :  { %s636_s14 = scalar_lea.vmem %s46_s18, 2048  ;;  %p641_p6 = scmp.lt.s32.totalorder %s46_s18, %s46_s18 }
  0x2c   :  { %p637_p5 = scmp.ne.s32.totalorder %s46_s18, %s636_s14  ;;  %p642_p7 = scmp.lt.s32.totalorder %s636_s14, %s636_s14 }
  0x2e   :  { %p643_p8 = por %p642_p7, %p641_p6 }
  0x30   :  { %p644_p9 = pnand %p643_p8, %p637_p5 }
  0x32   :  { %647 = shalt.err (!%p644_p9)
}
  0x33   :  { %51 = dma.hbm_to_vmem [thread:$0]  %s854_s3, 2048, %s46_s18, [#allocation6], %s701_s11, %s701_s11, %s702_s12  }
  0x34   :  { %s705_s16 = smov [#allocation8]   ;;  %s648_s21 = scalar_lea.hbm %s856_s5, 2048 }
  0x35   :  { %s59_s17 = sshll.u32 %s705_s16, 4  ;;  %p649_p10 = scmp.ne.s32.totalorder %s856_s5, %s648_s21  ;;  %s60_s17 = int_to_ptr.vmem [resolvable:$true] %s59_s17 }
  0x36   :  { %p652_p11 = scmp.lt.u32.totalorder %s648_s21, %s856_s5 }
  0x38   :  { %p654_p12 = pnand %p652_p11, %p649_p10 }
  0x3a   :  { %657 = shalt.err (!%p654_p12)
}
  0x3b   :  { %s658_s1 = scalar_lea.vmem %s60_s17, 2048  ;;  %p663_p0 = scmp.lt.s32.totalorder %s60_s17, %s60_s17 }
  0x3c   :  { %p659_p13 = scmp.ne.s32.totalorder %s60_s17, %s658_s1  ;;  %p664_p1 = scmp.lt.s32.totalorder %s658_s1, %s658_s1 }
  0x3e   :  { %p665_p2 = por %p664_p1, %p663_p0 }
  0x40   :  { %p666_p3 = pnand %p665_p2, %p659_p13 }
  0x42   :  { %669 = shalt.err (!%p666_p3)
}
  0x43   :  { %65 = dma.hbm_to_vmem [thread:$0]  %s856_s5, 2048, %s60_s17, [#allocation9], %s701_s11, %s701_s11, %s702_s12  }
  0x44   :  { %692 = dma.done.wait [#allocation3], 128  }
  0x45   :  { %693 = vsyncadd [#allocation3], 4294967168 }
  0x46   :  { %694 = dma.done.wait [#allocation6], 3072  }
  0x47   :  { %695 = vsyncadd [#allocation6], 4294964224 }
  0x48   :  { %696 = dma.done.wait [#allocation9], 2048  }
  0x49   :  { %697 = vsyncadd [#allocation9], 4294965248  ;;  %v706_v0 = vmov 0.0|0.0   ;;  %vm707_vm0 = vmmov 0   ;;  %v708_v1 = vmov 0.0   ;;  %v81_v2 = vld [vmem:[#allocation5] sm:$0xff] }
  0x4a   :  { %512 = vmatprep.subr.bf16.mxu0 %v706_v0  ;;  %439 = vmatprep.mubr.msk.f32.mxu0 %vm707_vm0, %v708_v1  ;;  %v82_v3 = vld [vmem:[#allocation5 + $0x8] sm:$0xff]  ;;  %v83_v4 = vld [vmem:[#allocation5 + $0x10] sm:$0xff]  ;;  %v84_v6 = vld [vmem:[#allocation5 + $0x18] sm:$0xff]  ;;  %vm96_vm1 = vcmask 523264   ;;  %s709_s28 = smov [#allocation10]  }
  0x4b   :  { %524 = vmatprep.subr.bf16.mxu1 %v706_v0  ;;  %474 = vmatprep.mubr.msk.f32.mxu1 %vm707_vm0, %v708_v1  ;;  %v513_v5 = vpack.c.bf16 %v82_v3, %v81_v2  ;;  %v516_v7 = vpack.c.bf16 %v84_v6, %v83_v4  ;;  %v171_v8 = vld [vmem:[#allocation7] sm:$0xff]  ;;  %v172_v9 = vld [vmem:[#allocation7 + $0x8] sm:$0xff]  ;;  %v173_v10 = vld [vmem:[#allocation7 + $0x10] sm:$0xff]  ;;  %s365_s29 = sshll.u32 %s709_s28, 4  ;;  %s366_s29 = int_to_ptr.vmem [resolvable:$true] %s365_s29 }
  0x4c   :  { %v85_v11 = vld [vmem:[#allocation5 + $0x20] sm:$0xff]  ;;  %v86_v12 = vld [vmem:[#allocation5 + $0x28] sm:$0xff]  ;;  %v525_v13 = vpack.c.bf16 %v172_v9, %v171_v8  ;;  %v174_v14 = vld [vmem:[#allocation7 + $0x18] sm:$0xff]  ;;  %s670_s30 = scalar_lea.vmem %s366_s29, 128  ;;  %p675_p5 = scmp.lt.s32.totalorder %s366_s29, %s366_s29 }
  0x4d   :  { %514 = vmatpush3.bf16.msra.mxu0 %v513_v5  ;;  %v528_v15 = vpack.c.bf16 %v174_v14, %v173_v10  ;;  %v519_v16 = vpack.c.bf16 %v86_v12, %v85_v11  ;;  %v175_v17 = vld [vmem:[#allocation7 + $0x20] sm:$0xff]  ;;  %v176_v18 = vld [vmem:[#allocation7 + $0x28] sm:$0xff]  ;;  %v87_v19 = vld [vmem:[#allocation5 + $0x30] sm:$0xff]  ;;  %p671_p4 = scmp.ne.s32.totalorder %s366_s29, %s670_s30  ;;  %p676_p6 = scmp.lt.s32.totalorder %s670_s30, %s670_s30 }
  0x4e   :  { %515 = vmatprep.subr.bf16.mxu0 %v706_v0  ;;  %526 = vmatpush3.bf16.msra.mxu1 %v525_v13  ;;  %v88_v20 = vld [vmem:[#allocation5 + $0x38] sm:$0xff]  ;;  %v531_v21 = vpack.c.bf16 %v176_v18, %v175_v17  ;;  %v177_v23 = vld [vmem:[#allocation7 + $0x30] sm:$0xff]  ;;  %v179_v27 = vld [vmem:[#allocation7 + $0x40] sm:$0xff] }
  0x4f   :  { %527 = vmatprep.subr.bf16.mxu1 %v706_v0  ;;  %v522_v22 = vpack.c.bf16 %v88_v20, %v87_v19  ;;  %v178_v24 = vld [vmem:[#allocation7 + $0x38] sm:$0xff]  ;;  %v180_v28 = vld [vmem:[#allocation7 + $0x48] sm:$0xff]  ;;  %v181_v30 = vld [vmem:[#allocation7 + $0x50] sm:$0xff]  ;;  %p677_p7 = por %p676_p6, %p675_p5 }
  0x50   :  { %v534_v25 = vpack.c.bf16 %v178_v24, %v177_v23  ;;  %v80_v26 = vld [vmem:[#allocation2] sm:$0xff]  ;;  %v537_v29 = vpack.c.bf16 %v180_v28, %v179_v27  ;;  %v183_v33 = vld [vmem:[#allocation7 + $0x60] sm:$0xff]  ;;  %v184_v34 = vld [vmem:[#allocation7 + $0x68] sm:$0xff] }
  0x51   :  { %517 = vmatpush3.bf16.msra.mxu0 %v516_v7  ;;  %v182_v31 = vld [vmem:[#allocation7 + $0x58] sm:$0xff]  ;;  %v543_v35 = vpack.c.bf16 %v184_v34, %v183_v33  ;;  %v185_v36 = vld [vmem:[#allocation7 + $0x70] sm:$0xff]  ;;  %v265_v39 = vld [vmem:[#allocation8] sm:$0xff]  ;;  %p678_p8 = pnand %p677_p7, %p671_p4 }
  0x52   :  { %518 = vmatprep.subr.bf16.mxu0 %v706_v0  ;;  %529 = vmatpush3.bf16.msra.mxu1 %v528_v15  ;;  %v540_v32 = vpack.c.bf16 %v182_v31, %v181_v30  ;;  %v186_v37 = vld [vmem:[#allocation7 + $0x78] sm:$0xff]  ;;  %v266_v40 = vld [vmem:[#allocation8 + $0x8] sm:$0xff]  ;;  %v267_v41 = vld [vmem:[#allocation8 + $0x10] sm:$0xff] }
  0x53   :  { %530 = vmatprep.subr.bf16.mxu1 %v706_v0  ;;  %v546_v38 = vpack.c.bf16 %v186_v37, %v185_v36  ;;  %v549_v42 = vpack.c.bf16 %v266_v40, %v265_v39  ;;  %v268_v43 = vld [vmem:[#allocation8 + $0x18] sm:$0xff]  ;;  %v269_v45 = vld [vmem:[#allocation8 + $0x20] sm:$0xff]  ;;  %v270_v46 = vld [vmem:[#allocation8 + $0x28] sm:$0xff] }
  0x54   :  { %v552_v44 = vpack.c.bf16 %v268_v43, %v267_v41  ;;  %v555_v47 = vpack.c.bf16 %v270_v46, %v269_v45  ;;  %v271_v48 = vld [vmem:[#allocation8 + $0x30] sm:$0xff]  ;;  %v272_v49 = vld [vmem:[#allocation8 + $0x38] sm:$0xff]  ;;  %v273_v51 = vld [vmem:[#allocation8 + $0x40] sm:$0xff] }
  0x55   :  { %520 = vmatpush3.bf16.msra.mxu0 %v519_v16  ;;  %v558_v50 = vpack.c.bf16 %v272_v49, %v271_v48  ;;  %v274_v52 = vld [vmem:[#allocation8 + $0x48] sm:$0xff]  ;;  %v275_v54 = vld [vmem:[#allocation8 + $0x50] sm:$0xff]  ;;  %v276_v55 = vld [vmem:[#allocation8 + $0x58] sm:$0xff] }
  0x56   :  { %521 = vmatprep.subr.bf16.mxu0 %v706_v0  ;;  %532 = vmatpush3.bf16.msra.mxu1 %v531_v21  ;;  %v561_v53 = vpack.c.bf16 %v274_v52, %v273_v51  ;;  %v564_v56 = vpack.c.bf16 %v276_v55, %v275_v54  ;;  %v277_v57 = vld [vmem:[#allocation8 + $0x60] sm:$0xff]  ;;  %v278_v58 = vld [vmem:[#allocation8 + $0x68] sm:$0xff]  ;;  %v376_v60 = vld [vmem:[%s853_s2] ss:$0 sm:$0xff] }
  0x57   :  { %533 = vmatprep.subr.bf16.mxu1 %v706_v0  ;;  %v567_v59 = vpack.c.bf16 %v278_v58, %v277_v57  ;;  %v279_v2 = vld [vmem:[#allocation8 + $0x70] sm:$0xff]  ;;  %v280_v3 = vld [vmem:[#allocation8 + $0x78] sm:$0xff] }
  0x58   :  { %v570_v4 = vpack.c.bf16 %v280_v3, %v279_v2  ;;  %v378_v5 = vld [vmem:[%s855_s4] ss:$0 sm:$0xff] }
  0x59   :  { %523 = vmatpush3.bf16.msra.mxu0 %v522_v22  ;;  %v379_v9 = vld [vmem:[%s857_s6] ss:$0 sm:$0xff] }
  0x5a   :  { %548 = vmatprep.subr.bf16.mxu0 %v706_v0  ;;  %535 = vmatpush3.bf16.msra.mxu1 %v534_v25 }
  0x5b   :  { %536 = vmatprep.subr.bf16.mxu1 %v706_v0 }
  0x5c   :  { %440 = vmatmul.mubr.msk.f32.vlgmr.msra.gmra.mrb[0].mxu0 %vm96_vm1, %v80_v26 }
  0x5d   :  { %509 = vmatprep.mubr.msk.f32.mxu0 %vm707_vm0, %v708_v1  ;;  %550 = vmatpush3.bf16.msra.mxu0 %v549_v42 }
  0x5e   :  { %538 = vmatpush3.bf16.msra.mxu1 %v537_v29  ;;  %551 = vmatprep.subr.bf16.mxu0 %v706_v0 }
  0x5f   :  { %539 = vmatprep.subr.bf16.mxu1 %v706_v0 }
  0x61   :  { %553 = vmatpush3.bf16.msra.mxu0 %v552_v44 }
  0x62   :  { %541 = vmatpush3.bf16.msra.mxu1 %v540_v32  ;;  %554 = vmatprep.subr.bf16.mxu0 %v706_v0 }
  0x63   :  { %542 = vmatprep.subr.bf16.mxu1 %v706_v0 }
  0x65   :  { %556 = vmatpush3.bf16.msra.mxu0 %v555_v47 }
  0x66   :  { %544 = vmatpush3.bf16.msra.mxu1 %v543_v35  ;;  %557 = vmatprep.subr.bf16.mxu0 %v706_v0 }
  0x67   :  { %545 = vmatprep.subr.bf16.mxu1 %v706_v0 }
  0x69   :  { %559 = vmatpush3.bf16.msra.mxu0 %v558_v50 }
  0x6a   :  { %547 = vmatpush3.bf16.msra.mxu1 %v546_v38  ;;  %560 = vmatprep.subr.bf16.mxu0 %v706_v0 }
  0x6d   :  { %562 = vmatpush3.bf16.msra.mxu0 %v561_v53 }
  0x6e   :  { %563 = vmatprep.subr.bf16.mxu0 %v706_v0 }
  0x71   :  { %565 = vmatpush3.bf16.msra.mxu0 %v564_v56 }
  0x72   :  { %566 = vmatprep.subr.bf16.mxu0 %v706_v0 }
  0x75   :  { %568 = vmatpush3.bf16.msra.mxu0 %v567_v59 }
  0x76   :  { %569 = vmatprep.subr.bf16.mxu0 %v706_v0 }
  0x79   :  { %571 = vmatpush3.bf16.msra.mxu0 %v570_v4 }
 0x12f   :  { %v166_v61 = vpop.f32.mrb[0].mxu0 }
 0x130   :  { %v167_v62 = vadd.f32 %v376_v60, %v166_v61  ;;  %v441_v63 = vpop.f32.mrb[1].mxu0 }
 0x132   :  { %v170_v1 = vmax.f32 %v167_v62, 0.0 }
 0x134   :  { %475 = vmatmul.mubr.f32.vlgmr.msra.gmra.mrb[0].mxu1 %v170_v1 }
 0x207   :  { %v260_v6 = vpop.f32.mrb[0].mxu1 }
 0x208   :  { %v261_v7 = vadd.f32 %v378_v5, %v260_v6  ;;  %v476_v0 = vpop.f32.mrb[1].mxu1 }
 0x20a   :  { %v264_v8 = vmax.f32 %v261_v7, 0.0 }
 0x20c   :  { %510 = vmatmul.mubr.f32.vlgmr.msra.gmra.mrb[2].mxu0 %v264_v8 }
 0x2df   :  { %v354_v10 = vpop.f32.mrb[2].mxu0 }
 0x2e0   :  { %v355_v11 = vadd.f32 %v379_v9, %v354_v10  ;;  %v511_v12 = vpop.f32.mrb[3].mxu0 }
 0x2e2   :  { %358 = vst [vmem:[#allocation10] sm:$0xff] %v355_v11 }
 0x2e3   :  { %681 = shalt.err (!%p678_p8)
}
 0x2e4   :  { %s682_s9 = scalar_lea.hbm %s858_s7, 128 }
 0x2e5   :  { %p683_p9 = scmp.ne.s32.totalorder %s858_s7, %s682_s9  ;;  %p686_p10 = scmp.lt.u32.totalorder %s682_s9, %s858_s7 }
 0x2e7   :  { %p688_p11 = pnand %p686_p10, %p683_p9 }
 0x2e9   :  { %691 = shalt.err (!%p688_p11)
}
 0x2ea   :  { %368 = dma.vmem_to_hbm [thread:$0]  %s366_s29, 128, %s858_s7, [#allocation4]  }
 0x2eb   :  { %698 = dma.done.wait [#allocation4], 128  }
 0x2ec   :  { %699 = vsyncadd [#allocation4], 4294967168 }
 0x2ed   :  { %372 = vsyncpa [#allocation3], 1 }
 0x2ee   :  { %373 = vsyncpa [#allocation6], 1 }
 0x2ef   :  { %374 = vsyncpa [#allocation9], 1 }
 0x2f0   :  { %375 = vsyncpa [#allocation4], 1 }

</bundles_post_ra>
